<compile_context>
chip_gen: v7x
topology: tpu7x:2x2x1
jax: 0.10.0
libtpu: 0.0.40
codegen_flags: <defaults>
</compile_context>

<pallas_src>
import jax
import jax.numpy as jnp
from jax.experimental import pallas as pl
from jax.experimental.pallas import tpu as pltpu


def ss_kernel(x00_ref, x01_ref, x10_ref, x11_ref, o_ref):
    # each x_ref: (n_blk, C, t_tile); o_ref: (n_blk, 5, C, t_tile)
    s00 = x00_ref[...]
    s01 = x01_ref[...]
    s10 = x10_ref[...]
    s11 = x11_ref[...]

    avg = (s00 + s01 + s10 + s11) * 0.25

    # Each store is a full (C, t_tile) slab at sublane offset 0 -> unmasked vst.
    o_ref[:, 0, :, :] = s00
    o_ref[:, 1, :, :] = s01
    o_ref[:, 2, :, :] = s10
    o_ref[:, 3, :, :] = s11
    o_ref[:, 4, :, :] = avg.astype(o_ref.dtype)


def _pick_tiles(N, C, T, dtype_bytes):
    """Choose (n_blk, t_tile).

    Targets ~4 MiB of real (input + output) bytes per grid step (per-step
    overhead ~0.35 us dominates tiny blocks) while keeping >= 2 grid blocks
    when possible so v7x's 2 TensorCores both get work.
    """
    target_step_bytes = 4 << 20

    # Lane-dense T tile: largest multiple of 128 that divides T (<= 4096),
    # otherwise take the full T extent as one lane-dense block.
    t_tile = T
    for m in range(4096 // 128, 0, -1):
        cand = m * 128
        if cand <= T and T % cand == 0:
            t_tile = cand
            break

    # Fold batch into the block until the per-step byte target is reached.
    per_n_bytes = 9 * C * t_tile * dtype_bytes  # 4 inputs + 5 output chunks
    n_blk = 1
    for cand in range(1, N + 1):
        if N % cand == 0 and cand * per_n_bytes <= target_step_bytes:
            n_blk = cand

    # Keep at least 2 grid blocks along a parallel axis when the problem allows.
    if (N // n_blk) * (T // t_tile) < 2:
        if n_blk > 1:
            smaller = [d for d in range(1, N) if N % d == 0]
            n_blk = max(smaller) if smaller else 1
        elif t_tile % 256 == 0:
            t_tile //= 2

    return n_blk, t_tile


def ss_forward(x):
    """x: (N, C, T, H, W) with H >= 2, W >= 2. Returns (N, 5*C, T)."""
    N, C, T, H, W = x.shape
    dtype_bytes = jnp.dtype(x.dtype).itemsize

    # Four taps as dense (N, C, T) operands; allow_input_fusion lets XLA fuse
    # the strided slices into the Pallas input DMA instead of an extra HBM pass.
    s00 = x[:, :, :, 0, 0]
    s01 = x[:, :, :, 0, 1]
    s10 = x[:, :, :, 1, 0]
    s11 = x[:, :, :, 1, 1]

    n_blk, t_tile = _pick_tiles(N, C, T, dtype_bytes)
    grid = (N // n_blk, T // t_tile)

    in_spec = pl.BlockSpec((n_blk, C, t_tile), lambda n, t: (n, 0, t))
    out_spec = pl.BlockSpec((n_blk, 5, C, t_tile), lambda n, t: (n, 0, 0, t))

    # VMEM budget: sublane padding (C -> multiple of pack) x double buffering.
    sublane_pack = 32 // dtype_bytes
    c_pad = -(-C // sublane_pack) * sublane_pack
    one_buffer_set = 9 * n_blk * c_pad * t_tile * dtype_bytes
    vmem_need = 2 * one_buffer_set  # double-buffered inputs + output
    vmem_limit = min(56 << 20, max(32 << 20, 2 * vmem_need))

    cost = pl.CostEstimate(
        flops=4 * N * C * T,
        transcendentals=0,
        bytes_accessed=9 * N * C * T * dtype_bytes,
    )

    out = pl.pallas_call(
        ss_kernel,
        out_shape=jax.ShapeDtypeStruct((N, 5, C, T), x.dtype),
        grid=grid,
        in_specs=[in_spec, in_spec, in_spec, in_spec],
        out_specs=out_spec,
        compiler_params=pltpu.CompilerParams(
            dimension_semantics=("parallel", "parallel"),
            allow_input_fusion=[True, True, True, True],
            vmem_limit_bytes=int(vmem_limit),
        ),
        cost_estimate=cost,
    )(s00, s01, s10, s11)

    # (N, 5, C, T) -> (N, 5*C, T): merge of adjacent dims, free (no relayout).
    return out.reshape(N, 5 * C, T)


def ss_reference(x):
    """Pure-JAX reference mirroring the PyTorch forward exactly."""
    slices = [x[:, :, :, a, b] for a in range(2) for b in range(2)]
    x_sum = sum(slices)
    avg = x_sum / 4.0
    return jnp.concatenate(slices + [avg], axis=1)


if __name__ == "__main__":
    key = jax.random.PRNGKey(0)
    N, C, T, H, W = 2, 4, 16, 2, 2
    x = jax.random.normal(key, (N, C, T, H, W), dtype=jnp.float32)

    out = ss_forward(x)
    out = jax.block_until_ready(out)

    ref = ss_reference(x)
    assert out.shape == (N, 5 * C, T), out.shape
    assert jnp.allclose(out, ref, atol=1e-6, rtol=1e-6), "mismatch vs reference"

    print("KERNEL_OK")
</pallas_src>

<mosaic_0001>
module attributes {stable_mosaic.version = 11 : i64} {
  func.func @ss_kernel(%arg0: i32, %arg1: i32, %arg2: memref<1x4x16xf32, #tpu.memory_space<vmem>>, %arg3: memref<1x4x16xf32, #tpu.memory_space<vmem>>, %arg4: memref<1x4x16xf32, #tpu.memory_space<vmem>>, %arg5: memref<1x4x16xf32, #tpu.memory_space<vmem>>, %arg6: memref<1x5x4x16xf32, #tpu.memory_space<vmem>>) attributes {dimension_semantics = [#tpu.dimension_semantics<parallel>, #tpu.dimension_semantics<parallel>], iteration_bounds = array<i64: 2, 1>, scalar_prefetch = 0 : i64, scratch_operands = 0 : i64, tpu.core_type = #tpu.core_type<tc>, window_params = [{transform_indices = @transform_0, window_bounds = array<i64: 1, 4, 16>}, {transform_indices = @transform_1, window_bounds = array<i64: 1, 4, 16>}, {transform_indices = @transform_2, window_bounds = array<i64: 1, 4, 16>}, {transform_indices = @transform_3, window_bounds = array<i64: 1, 4, 16>}, {transform_indices = @transform_4, window_bounds = array<i64: 1, 5, 4, 16>}]} {
    %c0 = arith.constant 0 : index
    %c0_0 = arith.constant 0 : index
    %c0_1 = arith.constant 0 : index
    %0 = vector.load %arg2[%c0, %c0_0, %c0_1] : memref<1x4x16xf32, #tpu.memory_space<vmem>>, vector<1x4x16xf32>
    %c0_2 = arith.constant 0 : index
    %c0_3 = arith.constant 0 : index
    %c0_4 = arith.constant 0 : index
    %1 = vector.load %arg3[%c0_2, %c0_3, %c0_4] : memref<1x4x16xf32, #tpu.memory_space<vmem>>, vector<1x4x16xf32>
    %c0_5 = arith.constant 0 : index
    %c0_6 = arith.constant 0 : index
    %c0_7 = arith.constant 0 : index
    %2 = vector.load %arg4[%c0_5, %c0_6, %c0_7] : memref<1x4x16xf32, #tpu.memory_space<vmem>>, vector<1x4x16xf32>
    %c0_8 = arith.constant 0 : index
    %c0_9 = arith.constant 0 : index
    %c0_10 = arith.constant 0 : index
    %3 = vector.load %arg5[%c0_8, %c0_9, %c0_10] : memref<1x4x16xf32, #tpu.memory_space<vmem>>, vector<1x4x16xf32>
    %4 = arith.addf %0, %1 : vector<1x4x16xf32>
    %5 = arith.addf %4, %2 : vector<1x4x16xf32>
    %6 = arith.addf %5, %3 : vector<1x4x16xf32>
    %cst = arith.constant 2.500000e-01 : f32
    %7 = vector.broadcast %cst : f32 to vector<1x4x16xf32>
    %8 = arith.mulf %6, %7 : vector<1x4x16xf32>
    %c0_11 = arith.constant 0 : index
    %c0_12 = arith.constant 0 : index
    %c0_13 = arith.constant 0 : index
    %c0_14 = arith.constant 0 : index
    %9 = vector.load %arg6[%c0_11, %c0_12, %c0_13, %c0_14] : memref<1x5x4x16xf32, #tpu.memory_space<vmem>>, vector<1x1x4x16xf32>
    %10 = vector.shape_cast %9 : vector<1x1x4x16xf32> to vector<1x4x16xf32>
    %11 = vector.shape_cast %0 : vector<1x4x16xf32> to vector<1x1x4x16xf32>
    tpu.vector_store %arg6[%c0_11, %c0_12, %c0_13, %c0_14], %11 {strides = array<i32>} : memref<1x5x4x16xf32, #tpu.memory_space<vmem>>, vector<1x1x4x16xf32>,
    %c0_15 = arith.constant 0 : index
    %c1 = arith.constant 1 : index
    %c0_16 = arith.constant 0 : index
    %c0_17 = arith.constant 0 : index
    %12 = vector.load %arg6[%c0_15, %c1, %c0_16, %c0_17] : memref<1x5x4x16xf32, #tpu.memory_space<vmem>>, vector<1x1x4x16xf32>
    %13 = vector.shape_cast %12 : vector<1x1x4x16xf32> to vector<1x4x16xf32>
    %14 = vector.shape_cast %1 : vector<1x4x16xf32> to vector<1x1x4x16xf32>
    tpu.vector_store %arg6[%c0_15, %c1, %c0_16, %c0_17], %14 {strides = array<i32>} : memref<1x5x4x16xf32, #tpu.memory_space<vmem>>, vector<1x1x4x16xf32>,
    %c0_18 = arith.constant 0 : index
    %c2 = arith.constant 2 : index
    %c0_19 = arith.constant 0 : index
    %c0_20 = arith.constant 0 : index
    %15 = vector.load %arg6[%c0_18, %c2, %c0_19, %c0_20] : memref<1x5x4x16xf32, #tpu.memory_space<vmem>>, vector<1x1x4x16xf32>
    %16 = vector.shape_cast %15 : vector<1x1x4x16xf32> to vector<1x4x16xf32>
    %17 = vector.shape_cast %2 : vector<1x4x16xf32> to vector<1x1x4x16xf32>
    tpu.vector_store %arg6[%c0_18, %c2, %c0_19, %c0_20], %17 {strides = array<i32>} : memref<1x5x4x16xf32, #tpu.memory_space<vmem>>, vector<1x1x4x16xf32>,
    %c0_21 = arith.constant 0 : index
    %c3 = arith.constant 3 : index
    %c0_22 = arith.constant 0 : index
    %c0_23 = arith.constant 0 : index
    %18 = vector.load %arg6[%c0_21, %c3, %c0_22, %c0_23] : memref<1x5x4x16xf32, #tpu.memory_space<vmem>>, vector<1x1x4x16xf32>
    %19 = vector.shape_cast %18 : vector<1x1x4x16xf32> to vector<1x4x16xf32>
    %20 = vector.shape_cast %3 : vector<1x4x16xf32> to vector<1x1x4x16xf32>
    tpu.vector_store %arg6[%c0_21, %c3, %c0_22, %c0_23], %20 {strides = array<i32>} : memref<1x5x4x16xf32, #tpu.memory_space<vmem>>, vector<1x1x4x16xf32>,
    %c0_24 = arith.constant 0 : index
    %c4 = arith.constant 4 : index
    %c0_25 = arith.constant 0 : index
    %c0_26 = arith.constant 0 : index
    %21 = vector.load %arg6[%c0_24, %c4, %c0_25, %c0_26] : memref<1x5x4x16xf32, #tpu.memory_space<vmem>>, vector<1x1x4x16xf32>
    %22 = vector.shape_cast %21 : vector<1x1x4x16xf32> to vector<1x4x16xf32>
    %23 = vector.shape_cast %8 : vector<1x4x16xf32> to vector<1x1x4x16xf32>
    tpu.vector_store %arg6[%c0_24, %c4, %c0_25, %c0_26], %23 {strides = array<i32>} : memref<1x5x4x16xf32, #tpu.memory_space<vmem>>, vector<1x1x4x16xf32>,
    return
  }
  func.func @transform_0(%arg0: i32, %arg1: i32) -> (i32, i32, i32) {
    %c0_i32 = arith.constant 0 : i32
    %c0_i32_0 = arith.constant 0 : i32
    return %arg0, %c0_i32, %arg1 : i32, i32, i32
  }
  func.func @transform_1(%arg0: i32, %arg1: i32) -> (i32, i32, i32) {
    %c0_i32 = arith.constant 0 : i32
    %c0_i32_0 = arith.constant 0 : i32
    return %arg0, %c0_i32, %arg1 : i32, i32, i32
  }
  func.func @transform_2(%arg0: i32, %arg1: i32) -> (i32, i32, i32) {
    %c0_i32 = arith.constant 0 : i32
    %c0_i32_0 = arith.constant 0 : i32
    return %arg0, %c0_i32, %arg1 : i32, i32, i32
  }
  func.func @transform_3(%arg0: i32, %arg1: i32) -> (i32, i32, i32) {
    %c0_i32 = arith.constant 0 : i32
    %c0_i32_0 = arith.constant 0 : i32
    return %arg0, %c0_i32, %arg1 : i32, i32, i32
  }
  func.func @transform_4(%arg0: i32, %arg1: i32) -> (i32, i32, i32, i32) {
    %c0_i32 = arith.constant 0 : i32
    %c0_i32_0 = arith.constant 0 : i32
    %c0_i32_1 = arith.constant 0 : i32
    return %arg0, %c0_i32, %c0_i32_0, %arg1 : i32, i32, i32, i32
  }
}

</mosaic_0001>

<bundles_post_ra>
// kernel: tpu_custom_call.1
= control target key start
LH: loop header
LB: loop body
LE: loop exit
PB: predicated region body
PF: predicated region fallthrough
CT: control target
= control target key end

     0   :  { %s1090_s0 = inlined_call_operand.hbm [shape: f32[2,4,16], index: 0, kind: input, shape index: {}]   ;;  %s1091_s1 = inlined_call_operand.hbm [shape: f32[2,4,16], index: 1, kind: input, shape index: {}]   ;;  %s1092_s2 = inlined_call_operand.hbm [shape: f32[2,4,16], index: 2, kind: input, shape index: {}]   ;;  %s1093_s3 = inlined_call_operand.vmem [shape: f32[2,4,16], index: 3, kind: input, shape index: {}]   ;;  %s1094_s4 = inlined_call_operand.hbm [shape: f32[2,5,4,16], index: 4, kind: output, shape index: {}]  }
   0x1   :  { %1103 = sst [smem:[#allocation16_spill]] %s1091_s1 }
   0x2   :  { %9 = vsyncpa [#allocation3], 0 }
   0x3   :  { %11 = vsyncpa [#allocation3 + $0x1], 0 }
   0x4   :  { %12 = vsyncpa [#allocation6], 0 }
   0x5   :  { %14 = vsyncpa [#allocation6 + $0x1], 0 }
   0x6   :  { %15 = vsyncpa [#allocation4], 0 }
   0x7   :  { %17 = vsyncpa [#allocation4 + $0x1], 0  ;;  %s819_s15 = smov 0   ;;  %s821_s16 = smov 0  }
   0x8   :  { %s823_s17 = smov 0   ;;  %s825_s18 = smov 0  }
   0x9   :  { %s827_s19 = smov 0   ;;  %s829_s20 = smov 0  }
   0xa LB: > { %1104 = sst [smem:[#allocation12_spill]] %s782_s19  ;;  %s850_s21 = sadd.s32 4294967295, %s786_s20   ;;  %s786_s20 = sphi %s829_s20, %s23_s20   ;;  %s782_s19 = sphi %s827_s19, %s1128_s19   ;;  %s778_s18 = sphi %s825_s18, %s1127_s18   ;;  %s774_s17 = sphi %s823_s17, %s1131_s17   ;;  %s770_s16 = sphi %s821_s16, %s1130_s16   ;;  %s766_s15 = sphi %s819_s15, %s1129_s15  }
   0xb   : > { %1105 = sst [smem:[#allocation13_spill]] %s786_s20  ;;  %s513_s22 = sadd.s32 4294967294, %s786_s20  }
   0xc   : > { %s35_s23 = sadd.s32 1, %s782_s19  ;;  %s44_s24 = sadd.s32 1, %s774_s17 }
   0xd   : > { %p37_p0 = scmp.ge.s32.totalorder %s35_s23, 2  ;;  %p51_p1 = scmp.ne.s32.totalorder %s774_s17, %s770_s16 }
   0xe   : > { %p52_p2 = scmp.eq.s32.totalorder %s786_s20, 0  ;;  %p57_p3 = scmp.ne.s32.totalorder %s770_s16, %s766_s15 }
   0xf   : > { %s1133_s23 = smov (%p37_p0, %s35_s23), 0  ;;  %p58_p5 = scmp.eq.s32.totalorder %s850_s21, 0 }
  0x10   : > { %1106 = sst [smem:[#allocation14_spill]] %s1133_s23  ;;  %p862_p4 = por %p52_p2, %p51_p1 }
  0x11   : > { %s39_s26 = ssub.s32 %s782_s19, %s1133_s23  ;;  %p167_p6 = scmp.eq.s32.totalorder %s850_s21, 1 }
  0x12   : > { %p42_p7 = scmp.eq.s32.totalorder %s39_s26, 0  ;;  %p870_p8 = por %p58_p5, %p57_p3 }
  0x13   : > { %p874_p9 = por %p167_p6, %p51_p1  ;;  %p173_p10 = scmp.eq.s32.totalorder %s513_s22, 1 }
  0x14   : > { %s1108_s27 = scalar_select %p870_p8, 1, 0 }
  0x15   : > { %s1109_s28 = scalar_select %p874_p9, 1, 0 }
  0x16   : > { %s879_s29 = scalar_select %p42_p7, %s774_s17, %s44_s24  }
  0x17   : > { %p881_p11 = por %p173_p10, %p57_p3  ;;  %p558_p13 = scmp.lt.s32.totalorder %s786_s20, 2 }
  0x18   : > { %1110 = sst [smem:[#allocation15_spill]] %s879_s29  ;;  %s1095_s5 = sand.u32 1, %s774_s17  }
  0x19   : > { %s1111_s30 = scalar_select %p881_p11, 1, 0 }
  0x1a   : > { %s890_s6 = sshll.u32 %s1095_s5, 2  ;;  %s893_s7 = sshll.u32 %s782_s19, 6 }
  0x1b   : > { %p897_p0 = pnand %p558_p13, %p862_p4  ;;  %s212_s9 = sand.u32 1, %s786_s20  }
  0x1c   : > { %s1113_s1 = sld [smem:[#allocation16_spill]]  ;;  %s216_s13 = scalar_lea.vmem [#allocation5], %s890_s6 }
  0x1d   : > { %s1112_s8 = scalar_select %p897_p0, 1, 0 }
  0x1e   : > { %s224_s14 = sshll.u32 %s216_s13, 4  ;;  %s913_s22 = scalar_lea.sflag [#allocation6], %s212_s9  ;;  %s910_s14 = int_to_ptr.vmem [resolvable:$true] %s224_s14 }
  0x1f   : > { %p919_p4 = pneg %p897_p0 }
  0x22   : > { %s906_s12 = scalar_lea.hbm %s1113_s1, %s893_s7  ;;  %s615_s11 = scalar_lea.hbm %s1113_s1, 128 }
  0x23   : > { %s610_s24 = scalar_lea.hbm %s906_s12, 64  ;;  %p616_p7 = scmp.lt.u32.totalorder %s906_s12, %s1113_s1 }
  0x24   : > { %p611_p3 = scmp.ne.s32.totalorder %s906_s12, %s610_s24  ;;  %p617_p10 = scmp.lt.u32.totalorder %s615_s11, %s610_s24 }
  0x25   : > { %p619_p12 = scmp.lt.u32.totalorder %s610_s24, %s906_s12 }
  0x26   : > { %p613_p5 = pnand %p919_p4, %p611_p3  ;;  %p618_p13 = por %p617_p10, %p616_p7 }
  0x28   : > { %p614_p6 = pneg %p613_p5  ;;  %p620_p1 = por %p619_p12, %p618_p13 }
  0x2a   : > { %p621_p2 = pnand %p620_p1, %p614_p6 }
  0x2c   : > { %624 = shalt.err (!%p621_p2)
}
  0x2d   : > { %s625_s9 = scalar_lea.vmem %s910_s14, 64  ;;  %s788_s26 = smov [#allocation5]  }
  0x2e   : > { %p626_p3 = scmp.ne.s32.totalorder %s910_s14, %s625_s9  ;;  %s630_s10 = sshll.u32 %s788_s26, 4  ;;  %s631_s10 = int_to_ptr.vmem [resolvable:$false] %s630_s10 }
  0x2f   : > { %s632_s5 = scalar_lea.vmem %s631_s10, 128  ;;  %p633_p9 = scmp.lt.s32.totalorder %s910_s14, %s631_s10 }
  0x30   : > { %p628_p5 = pnand %p626_p3, %p919_p4  ;;  %p634_p8 = scmp.lt.s32.totalorder %s632_s5, %s625_s9 }
  0x32   : > { %p629_p11 = pneg %p628_p5  ;;  %p635_p7 = por %p634_p8, %p633_p9 }
  0x34   : > { %p636_p10 = pnand %p635_p7, %p629_p11 }
  0x36   : > { %639 = shalt.err (!%p636_p10)
}
  0x37   : > { %550 = dma.hbm_to_vmem [thread:$0]  (!%p897_p0), %s906_s12, 64, %s910_s14, %s913_s22  }
  0x38   : > { %p1115_p12 = scmp.lt.s32.totalorder %s786_s20, 3  ;;  %p1116_p1 = scmp.ge.s32.totalorder %s786_s20, 1 }
  0x39   : > { %s955_s9 = scalar_lea.hbm %s1090_s0, %s893_s7  ;;  %s197_s26 = scalar_lea.vmem [#allocation2], %s890_s6 }
  0x3a   : > { %p947_p2 = pnand %p1116_p1, %p1115_p12  ;;  %s205_s10 = sshll.u32 %s197_s26, 4  ;;  %s958_s10 = int_to_ptr.vmem [resolvable:$true] %s205_s10 }
  0x3b   : > { %s964_s5 = scalar_lea.hbm %s1092_s2, %s893_s7  ;;  %s1118_s1 = sand.u32 1, %s774_s17  }
  0x3c   : > { %s1117_s24 = scalar_select %p947_p2, 1, 0 }
  0x3d   : > { %s194_s23 = scalar_lea.sflag [#allocation3], %s1118_s1  ;;  %s640_s19 = scalar_lea.hbm %s955_s9, 64 }
  0x3e   : > { %p641_p8 = scmp.ne.s32.totalorder %s955_s9, %s640_s19  ;;  %s645_s29 = scalar_lea.hbm %s1090_s0, 128 }
  0x3f   : > { %p646_p6 = scmp.lt.u32.totalorder %s955_s9, %s1090_s0  ;;  %p647_p13 = scmp.lt.u32.totalorder %s645_s29, %s640_s19 }
  0x40   : > { %p643_p9 = pnand %p641_p8, %p919_p4  ;;  %p649_p5 = scmp.lt.u32.totalorder %s640_s19, %s955_s9 }
  0x41   : > { %p648_p3 = por %p647_p13, %p646_p6 }
  0x42   : > { %p644_p11 = pneg %p643_p9 }
  0x43   : > { %p650_p7 = por %p649_p5, %p648_p3 }
  0x45   : > { %p651_p10 = pnand %p650_p7, %p644_p11 }
  0x47   : > { %654 = shalt.err (!%p651_p10)
}
  0x48   : > { %s655_s1 = scalar_lea.vmem %s958_s10, 64  ;;  %s789_s7 = smov [#allocation2]  }
  0x49   : > { %p656_p12 = scmp.ne.s32.totalorder %s958_s10, %s655_s1  ;;  %s660_s12 = sshll.u32 %s789_s7, 4  ;;  %s661_s12 = int_to_ptr.vmem [resolvable:$false] %s660_s12 }
  0x4a   : > { %s662_s20 = scalar_lea.vmem %s661_s12, 128  ;;  %p663_p9 = scmp.lt.s32.totalorder %s958_s10, %s661_s12 }
  0x4b   : > { %p658_p1 = pnand %p656_p12, %p919_p4  ;;  %p664_p2 = scmp.lt.s32.totalorder %s662_s20, %s655_s1 }
  0x4d   : > { %p659_p8 = pneg %p658_p1  ;;  %p665_p6 = por %p664_p2, %p663_p9 }
  0x4f   : > { %p666_p13 = pnand %p665_p6, %p659_p8 }
  0x51   : > { %669 = shalt.err (!%p666_p13)
}
  0x52   : > { %547 = dma.hbm_to_vmem [thread:$0]  (!%p897_p0), %s955_s9, 64, %s958_s10, %s194_s23  }
  0x53   : > { %s235_s19 = scalar_lea.vmem [#allocation7], %s890_s6  ;;  %s670_s14 = scalar_lea.hbm %s964_s5, 64 }
  0x54   : > { %s243_s29 = sshll.u32 %s235_s19, 4  ;;  %p671_p11 = scmp.ne.s32.totalorder %s964_s5, %s670_s14  ;;  %s244_s29 = int_to_ptr.vmem [resolvable:$true] %s243_s29 }
  0x55   : > { %s675_s26 = scalar_lea.hbm %s1092_s2, 128  ;;  %p676_p5 = scmp.lt.u32.totalorder %s964_s5, %s1092_s2 }
  0x56   : > { %p673_p2 = pnand %p671_p11, %p919_p4  ;;  %p677_p7 = scmp.lt.u32.totalorder %s675_s26, %s670_s14 }
  0x57   : > { %p679_p12 = scmp.lt.u32.totalorder %s670_s14, %s964_s5 }
  0x58   : > { %p674_p3 = pneg %p673_p2  ;;  %p678_p10 = por %p677_p7, %p676_p5 }
  0x5a   : > { %p680_p1 = por %p679_p12, %p678_p10 }
  0x5c   : > { %p681_p8 = pnand %p680_p1, %p674_p3 }
  0x5e   : > { %684 = shalt.err (!%p681_p8)
}
  0x5f   : > { %s685_s23 = scalar_lea.vmem %s244_s29, 64  ;;  %s790_s6 = smov [#allocation7]  }
  0x60   : > { %p686_p9 = scmp.ne.s32.totalorder %s244_s29, %s685_s23  ;;  %s690_s9 = sshll.u32 %s790_s6, 4  ;;  %s691_s9 = int_to_ptr.vmem [resolvable:$false] %s690_s9 }
  0x61   : > { %s692_s10 = scalar_lea.vmem %s691_s9, 128  ;;  %p693_p11 = scmp.lt.s32.totalorder %s244_s29, %s691_s9 }
  0x62   : > { %p688_p6 = pnand %p686_p9, %p919_p4  ;;  %p694_p2 = scmp.lt.s32.totalorder %s692_s10, %s685_s23 }
  0x64   : > { %p689_p13 = pneg %p688_p6  ;;  %p695_p0 = por %p694_p2, %p693_p11 }
  0x66   : > { %p696_p5 = pnand %p695_p0, %p689_p13 }
  0x68   : > { %699 = shalt.err (!%p696_p5)
}
  0x69   : > { %p1119_p7 = scmp.ne.s32.totalorder %s1112_s8, 0  ;;  %p1120_p3 = scmp.ne.s32.totalorder %s1117_s24, 0 }
  0x6a   : > { %s1011_s25 = sand.u32 (!%p1120_p3), 1, %s770_s16   ;;  %p1121_p4 = scmp.ne.s32.totalorder (!%p1120_p3), %s1108_s27, 0 }
  0x6b   : > { %553 = dma.hbm_to_vmem [thread:$0]  (!%p1119_p7), %s964_s5, 64, %s244_s29, %s913_s22  }
  0x6c   : > { %262 = sbr.rel (%p1120_p3) target bundleno = 149 (0x95), region = 36  ;;  %s523_s12 = sshll.u32 (!%p1120_p3), %s1011_s25, 2 }
  0x6d   : > { %s265_s20 = scalar_lea.sflag (!%p1120_p3), [#allocation3], %s1011_s25  ;;  %s268_s19 = scalar_lea.vmem (!%p1120_p3), [#allocation2], %s523_s12 }
  0x73   : > { %753 = dma.done.wait (%p1121_p4), %s265_s20, 64  }
  0x74   : > { %755 = vsyncadd (%p1121_p4), %s265_s20, 4294967232  ;;  %s273_s8 = sand.u32 1, %s850_s21   ;;  %s277_s24 = scalar_lea.vmem [#allocation5], %s523_s12 }
  0x75   : > { %s274_s22 = scalar_lea.sflag [#allocation6], %s273_s8 }
  0x76   : > { %757 = dma.done.wait (%p1121_p4), %s274_s22, 128  }
  0x77   : > { %759 = vsyncadd (%p1121_p4), %s274_s22, 4294967168  ;;  %s534_s5 = smul.u32 20, %s1011_s25  ;;  %p328_p0 = scmp.lt.s32.totalorder %s778_s18, 1  ;;  %vm343_vm0 = vcmask 125952   ;;  %v335_v0 = vld [vmem:[%s268_s19] sm:$0xf] }
  0x78   : > { %v336_v1 = vld [vmem:[%s277_s24] sm:$0xf]  ;;  %s286_s14 = scalar_lea.vmem [#allocation7], %s523_s12  ;;  %s535_s7 = smul.u32 320, %s778_s18 }
  0x79   : > { %s329_s29 = scalar_select %p328_p0, %s778_s18, 1  ;;  %v337_v2 = vld [vmem:[%s286_s14] sm:$0xf]  ;;  %v339_v3 = vadd.f32 %v336_v1, %v335_v0 }
  0x7a   : > { %s327_s21 = scalar_lea.vmem [#allocation8], %s534_s5  ;;  %s1040_s9 = scalar_lea.hbm %s1094_s4, %s535_s7 }
  0x7b   : > { %344 = vst.msk [vmem:[%s327_s21] sm:$0xf] %vm343_vm0, %v335_v0  ;;  %527 = vst.msk [vmem:[%s327_s21 + $0x4] sm:$0xf] %vm343_vm0, %v336_v1  ;;  %s526_s27 = sshll.u32 %s329_s29, 2  ;;  %s368_s1 = sshll.u32 %s327_s21, 4  ;;  %v340_v4 = vadd.f32 %v339_v3, %v337_v2  ;;  %s1035_s1 = int_to_ptr.vmem [resolvable:$true] %s368_s1 }
  0x7c   : > { %528 = vst.msk [vmem:[%s327_s21 + $0x8] sm:$0xf] %vm343_vm0, %v337_v2  ;;  %s334_s26 = scalar_lea.vmem %s1093_s3, %s526_s27  ;;  %s354_s10 = scalar_lea.sflag [#allocation4], %s1011_s25 }
  0x7d   : > { %v338_v5 = vld [vmem:[%s334_s26] sm:$0xf]  ;;  %s700_s12 = scalar_lea.vmem %s1035_s1, 320  ;;  %p1122_p12 = scmp.ne.s32.totalorder %s1109_s28, 0 }
  0x7e   : > { %529 = vst.msk [vmem:[%s327_s21 + $0xc] sm:$0xf] %vm343_vm0, %v338_v5  ;;  %v341_v6 = vadd.f32 %v340_v4, %v338_v5  ;;  %p701_p10 = scmp.ne.s32.totalorder %s1035_s1, %s700_s12  ;;  %s791_s18 = smov [#allocation8]  }
  0x7f   : > { %s704_s20 = sshll.u32 %s791_s18, 4  ;;  %s705_s20 = int_to_ptr.vmem [resolvable:$false] %s704_s20 }
  0x80   : > { %v342_v7 = vmul.f32 0.25, %v341_v6  ;;  %p702_p1 = pnand %p701_p10, %p1122_p12  ;;  %s706_s19 = scalar_lea.vmem %s705_s20, 640 }
  0x81   : > { %p707_p9 = scmp.lt.s32.totalorder %s1035_s1, %s705_s20  ;;  %p708_p6 = scmp.lt.s32.totalorder %s706_s19, %s700_s12 }
  0x82   : > { %530 = vst.msk [vmem:[%s327_s21 + $0x10] sm:$0xf] %vm343_vm0, %v342_v7  ;;  %p703_p8 = pneg %p702_p1 }
  0x83   : > { %p709_p13 = por %p708_p6, %p707_p9 }
  0x85   : > { %p710_p11 = pnand %p709_p13, %p703_p8 }
  0x87   : > { %713 = shalt.err (!%p710_p11)
}
  0x88   : > { %s714_s8 = scalar_lea.hbm %s1040_s9, 320  ;;  %s718_s5 = scalar_lea.hbm %s1094_s4, 640 }
  0x89   : > { %p715_p2 = scmp.ne.s32.totalorder %s1040_s9, %s714_s8  ;;  %p719_p3 = scmp.lt.u32.totalorder %s1040_s9, %s1094_s4 }
  0x8a   : > { %p720_p4 = scmp.lt.u32.totalorder %s718_s5, %s714_s8  ;;  %p722_p10 = scmp.lt.u32.totalorder %s714_s8, %s1040_s9 }
  0x8b   : > { %p716_p5 = pnand %p715_p2, %p1122_p12 }
  0x8c   : > { %p721_p0 = por %p720_p4, %p719_p3 }
  0x8d   : > { %p717_p7 = pneg %p716_p5 }
  0x8e   : > { %p723_p1 = por %p722_p10, %p721_p0 }
  0x90   : > { %p724_p8 = pnand %p723_p1, %p717_p7 }
  0x92   : > { %727 = shalt.err (!%p724_p8)
}
  0x93   : > { %s792_s21 = smov 64   ;;  %s793_s27 = smov 4  }
  0x94   : > { %542 = dma.vmem_to_hbm [thread:$0]  (%p1122_p12), %s1035_s1, 320, %s1040_s9, %s354_s10, %s792_s21, %s792_s21, %s793_s27  }
  0x95 PF: > { %s1123_s11 = sld [smem:[#allocation13_spill]]  ;;  %s383_s13 = sand.u32 1, %s766_s15  }
  0x96   : > { %p1124_p9 = scmp.ne.s32.totalorder %s1111_s30, 0  ;;  %s384_s26 = scalar_lea.sflag [#allocation4], %s383_s13 }
  0x9b   : > { %p1125_p6 = scmp.ge.s32.totalorder %s1123_s11, 2 }
  0x9d   : > { %p555_p13 = pnand %p1125_p6, %p1124_p9 }
  0x9f   : > { %761 = dma.done.wait (!%p555_p13), %s384_s26, 320  }
  0xa0   : > { %763 = vsyncadd (!%p555_p13), %s384_s26, 4294966976  ;;  %s23_s20 = sadd.s32 1, %s1123_s11   ;;  %s1126_s7 = sld [smem:[#allocation15_spill]] }
  0xa1   : > { %p20_p11 = scmp.ge.s32.totalorder %s23_s20, 4   ;;  %s1127_s18 = sld [smem:[#allocation12_spill]] }
  0xa2   : > { %s1128_s19 = sld [smem:[#allocation14_spill]]  ;;  %s1129_s15 = smov %s770_s16 }
  0xa3   : > { %s1130_s16 = smov %s774_s17  ;;  %22 = sbr.rel (!%p20_p11) target bundleno = 10 (0xa), region = 112 }
  0xa6   : > { %s1131_s17 = smov %s1126_s7 }
  0xaa   :  { %389 = vsyncpa [#allocation3], 1 }
  0xab   :  { %391 = vsyncpa [#allocation3 + $0x1], 1 }
  0xac   :  { %392 = vsyncpa [#allocation6], 1 }
  0xad   :  { %394 = vsyncpa [#allocation6 + $0x1], 1 }
  0xae   :  { %395 = vsyncpa [#allocation4], 1 }
  0xaf   :  { %397 = vsyncpa [#allocation4 + $0x1], 1 }

</bundles_post_ra>
